<compile_context>
chip_gen: v6e
topology: v6e:2x2x1
jax: 0.10.0
libtpu: 0.0.40
codegen_flags: <defaults>
</compile_context>

<pallas_src>
import functools

import jax
import jax.numpy as jnp
from jax.experimental import pallas as pl
from jax.experimental.pallas import tpu as pltpu


# ---------------------------------------------------------------------------
# Kernels
# ---------------------------------------------------------------------------

def _entropy_kernel(x_ref, o_ref):
    """Softmax entropy of raw logits, reduced over the class (lane) axis.

    entropy = -sum(p * log p) with p = softmax(x)
            = log(s) - sum(e * shifted) / s,   e = exp(x - max), s = sum(e)
    """
    x = x_ref[...].astype(jnp.float32)
    m = jnp.max(x, axis=-1, keepdims=True)
    shifted = x - m
    e = jnp.exp(shifted)
    s = jnp.sum(e, axis=-1, keepdims=True)
    w = jnp.sum(e * shifted, axis=-1, keepdims=True)
    # EUP approx reciprocal + one Newton-Raphson step (~f32 accuracy, per-row sized).
    r = pl.reciprocal(s, approx=True)
    r = r * (2.0 - s * r)
    o_ref[...] = (jnp.log(s) - w * r).astype(o_ref.dtype)


def _entropy_after_softmax_kernel(x_ref, o_ref, *, eps):
    """Entropy of rows that already sum to 1: -sum(p * log(p + eps))."""
    p = x_ref[...].astype(jnp.float32)
    ent = -jnp.sum(p * jnp.log(p + eps), axis=-1, keepdims=True)
    o_ref[...] = ent.astype(o_ref.dtype)


# ---------------------------------------------------------------------------
# Wrapper
# ---------------------------------------------------------------------------

def _round_up(value: int, multiple: int) -> int:
    return ((value + multiple - 1) // multiple) * multiple


def _round_down(value: int, multiple: int) -> int:
    return max(multiple, (value // multiple) * multiple)


def _vmem_capacity_bytes() -> int:
    """Physical VMEM per core; conservative (v7x) fallback if the query fails."""
    try:
        info = pltpu.get_tpu_info()
        cap = getattr(info, "vmem_capacity_bytes", None)
        if cap:
            return int(cap)
    except Exception:
        pass
    return 64 * 1024 * 1024


def entropy_loss(logits, *, after_softmax: bool = False, return_mean: bool = True):
    """Pallas implementation of pytorch_adapt.layers.EntropyLoss.forward.

    logits: [N, C]. Raw logits if after_softmax=False, else per-row probabilities.
    Math runs in f32 in-kernel regardless of the input dtype (no wrapper upcast, so
    bf16 inputs stream at half the HBM bandwidth of f32). Result dtype is f32.
    """
    logits = jnp.asarray(logits)
    N, C = logits.shape
    itemsize = jnp.dtype(logits.dtype).itemsize

    # ---- Row-tile sizing: VMEM-budgeted and DMA-sweet-spot capped -----------
    c_pad = _round_up(C, 128)                 # lane-padded row width in VMEM
    in_row_bytes = c_pad * itemsize           # streamed bytes per row (native dtype)
    f32_row_bytes = c_pad * 4
    # 2x double-buffered input block + ~4 live f32 full-tile temporaries in the
    # softmax chain + 2x double-buffered (tile_n, 1) output (lane-padded vregs).
    per_row_vmem = 2 * in_row_bytes + 4 * f32_row_bytes + 2 * 128 * 4

    vmem_cap = _vmem_capacity_bytes()
    usable = max(8 << 20, int(vmem_cap * 0.7))          # headroom for Mosaic scratch
    tile_cap_vmem = max(8, usable // per_row_vmem)
    tile_cap_dma = max(8, (4 << 20) // in_row_bytes)     # ~4 MiB input block / step
    tile_cap = min(tile_cap_vmem, tile_cap_dma)
    # TODO(synk): extremely wide rows (C * 4 bytes approaching VMEM) would need a
    # class-axis grid with an online max/sum; full-C blocks are assumed here.
    tile_n = N if N <= tile_cap else _round_down(tile_cap, 8)

    if after_softmax:
        # Mirrors pytorch_metric_learning's small_val(dtype) == finfo(input dtype).tiny
        # (eps comes from the *input* dtype, while the math runs in f32).
        eps = float(jnp.finfo(logits.dtype).tiny)
        kernel = functools.partial(_entropy_after_softmax_kernel, eps=eps)
    else:
        kernel = _entropy_kernel

    out = pl.pallas_call(
        kernel,
        out_shape=jax.ShapeDtypeStruct((N, 1), jnp.float32),
        grid_spec=pltpu.PrefetchScalarGridSpec(
            num_scalar_prefetch=0,
            grid=(pl.cdiv(N, tile_n),),
            in_specs=[pl.BlockSpec((tile_n, C), lambda i: (i, 0))],
            out_specs=pl.BlockSpec((tile_n, 1), lambda i: (i, 0)),
        ),
        compiler_params=pltpu.CompilerParams(
            dimension_semantics=("parallel",),
            vmem_limit_bytes=int(vmem_cap * 0.9),
        ),
    )(logits)

    entropies = out[:, 0]
    if return_mean:
        # Kept in the wrapper: the N*4-byte writeback is negligible vs. the N*C read,
        # and an in-kernel accumulator would force a serial ("arbitrary") grid.
        return jnp.mean(entropies)
    return entropies


# ---------------------------------------------------------------------------
# Pure-JAX reference
# ---------------------------------------------------------------------------

def _reference(logits, after_softmax, return_mean):
    x = jnp.asarray(logits, jnp.float32)
    if after_softmax:
        eps = jnp.finfo(jnp.asarray(logits).dtype).tiny
        ent = -jnp.sum(x * jnp.log(x + eps), axis=1)
    else:
        p = jax.nn.softmax(x, axis=1)
        logp = jax.nn.log_softmax(x, axis=1)
        ent = -jnp.sum(p * logp, axis=1)
    return jnp.mean(ent) if return_mean else ent


# ---------------------------------------------------------------------------
# Driver
# ---------------------------------------------------------------------------

if __name__ == "__main__":
    key = jax.random.PRNGKey(0)

    # Small shapes: batch=8 rows, 16 classes.
    N, C = 8, 16
    logits = jax.random.normal(key, (N, C), dtype=jnp.float32)

    # Default module config: after_softmax=False, return_mean=True.
    out_mean = jax.block_until_ready(entropy_loss(logits))
    ref_mean = _reference(logits, after_softmax=False, return_mean=True)
    assert jnp.allclose(out_mean, ref_mean, atol=1e-5, rtol=1e-5)

    # return_mean=False path (per-row entropies).
    out_rows = jax.block_until_ready(entropy_loss(logits, return_mean=False))
    ref_rows = _reference(logits, after_softmax=False, return_mean=False)
    assert jnp.allclose(out_rows, ref_rows, atol=1e-5, rtol=1e-5)

    # after_softmax=True path.
    probs = jax.nn.softmax(logits, axis=1)
    out_as = jax.block_until_ready(entropy_loss(probs, after_softmax=True))
    ref_as = _reference(probs, after_softmax=True, return_mean=True)
    assert jnp.allclose(out_as, ref_as, atol=1e-5, rtol=1e-5)

    # Wider class count (still small): 16 rows, 256 classes.
    logits2 = jax.random.normal(jax.random.PRNGKey(0), (16, 256), dtype=jnp.float32)
    out2 = jax.block_until_ready(entropy_loss(logits2, return_mean=False))
    ref2 = _reference(logits2, after_softmax=False, return_mean=False)
    assert jnp.allclose(out2, ref2, atol=1e-5, rtol=1e-5)

    # bf16 pass-through (no wrapper upcast; f32 math in-kernel, f32 result).
    logits_bf16 = logits2.astype(jnp.bfloat16)
    out_bf = jax.block_until_ready(entropy_loss(logits_bf16, return_mean=False))
    ref_bf = _reference(logits_bf16, after_softmax=False, return_mean=False)
    assert jnp.allclose(out_bf, ref_bf, atol=1e-4, rtol=1e-4)

    print("KERNEL_OK")
</pallas_src>

<mosaic_0001>
module attributes {stable_mosaic.version = 11 : i64} {
  func.func @_entropy_kernel(%arg0: i32, %arg1: memref<8x16xf32, #tpu.memory_space<vmem>>, %arg2: memref<8x1xf32, #tpu.memory_space<vmem>>) attributes {dimension_semantics = [#tpu.dimension_semantics<parallel>], iteration_bounds = array<i64: 1>, scalar_prefetch = 0 : i64, scratch_operands = 0 : i64, tpu.core_type = #tpu.core_type<tc>, window_params = [{transform_indices = @transform_0, window_bounds = array<i64: 8, 16>}, {transform_indices = @transform_1, window_bounds = array<i64: 8, 1>}]} {
    %c0 = arith.constant 0 : index
    %c0_0 = arith.constant 0 : index
    %0 = vector.load %arg1[%c0, %c0_0] : memref<8x16xf32, #tpu.memory_space<vmem>>, vector<8x16xf32>
    %cst = arith.constant dense<0xFF800000> : vector<8xf32>
    %1 = vector.multi_reduction <maximumf>, %0, %cst [1] : vector<8x16xf32> to vector<8xf32>
    %2 = vector.shape_cast %1 : vector<8xf32> to vector<8x1xf32>
    %3 = vector.broadcast %2 : vector<8x1xf32> to vector<8x16xf32>
    %4 = arith.subf %0, %3 : vector<8x16xf32>
    %5 = math.exp %4 : vector<8x16xf32>
    %cst_1 = arith.constant dense<0.000000e+00> : vector<8xf32>
    %6 = vector.multi_reduction <add>, %5, %cst_1 [1] : vector<8x16xf32> to vector<8xf32>
    %7 = vector.shape_cast %6 : vector<8xf32> to vector<8x1xf32>
    %8 = arith.mulf %5, %4 : vector<8x16xf32>
    %cst_2 = arith.constant dense<0.000000e+00> : vector<8xf32>
    %9 = vector.multi_reduction <add>, %8, %cst_2 [1] : vector<8x16xf32> to vector<8xf32>
    %10 = vector.shape_cast %9 : vector<8xf32> to vector<8x1xf32>
    %11 = tpu.reciprocal %7 {approx = true} : vector<8x1xf32> -> vector<8x1xf32>
    %12 = arith.mulf %7, %11 : vector<8x1xf32>
    %cst_3 = arith.constant 2.000000e+00 : f32
    %13 = vector.broadcast %cst_3 : f32 to vector<8x1xf32>
    %14 = arith.subf %13, %12 : vector<8x1xf32>
    %15 = arith.mulf %11, %14 : vector<8x1xf32>
    %16 = math.log %7 : vector<8x1xf32>
    %17 = arith.mulf %10, %15 : vector<8x1xf32>
    %18 = arith.subf %16, %17 : vector<8x1xf32>
    %c0_4 = arith.constant 0 : index
    %c0_5 = arith.constant 0 : index
    %19 = vector.load %arg2[%c0_4, %c0_5] : memref<8x1xf32, #tpu.memory_space<vmem>>, vector<8x1xf32>
    tpu.vector_store %arg2[%c0_4, %c0_5], %18 {strides = array<i32>} : memref<8x1xf32, #tpu.memory_space<vmem>>, vector<8x1xf32>,
    return
  }
  func.func @transform_0(%arg0: i32) -> (i32, i32) {
    %c0_i32 = arith.constant 0 : i32
    %c0_i32_0 = arith.constant 0 : i32
    return %arg0, %c0_i32 : i32, i32
  }
  func.func @transform_1(%arg0: i32) -> (i32, i32) {
    %c0_i32 = arith.constant 0 : i32
    %c0_i32_0 = arith.constant 0 : i32
    return %arg0, %c0_i32 : i32, i32
  }
}

</mosaic_0001>

<bundles_post_ra>
// kernel: tpu_custom_call.1
= control target key start
LH: loop header
LB: loop body
LE: loop exit
PB: predicated region body
PF: predicated region fallthrough
CT: control target
= control target key end

     0   :  { %6 = vsyncpa [#allocation3], 0  ;;  %s79_s6 = smov [#allocation2]   ;;  %s96_s0 = inlined_call_operand.hbm [shape: f32[8,16], index: 0, kind: input, shape index: {}]   ;;  %s97_s1 = inlined_call_operand.vmem [shape: f32[8,1], index: 1, kind: output, shape index: {}]  }
   0x1   :  { %s13_s7 = sshll.u32 %s79_s6, 4  ;;  %s14_s7 = int_to_ptr.vmem [resolvable:$true] %s13_s7 }
   0x2   :  { %s65_s8 = scalar_lea.vmem %s14_s7, 128  ;;  %p70_p1 = scmp.lt.s32.totalorder %s14_s7, %s14_s7 }
   0x3   :  { %p66_p0 = scmp.ne.s32.totalorder %s14_s7, %s65_s8  ;;  %p71_p2 = scmp.lt.s32.totalorder %s65_s8, %s65_s8 }
   0x5   :  { %p72_p3 = por %p71_p2, %p70_p1 }
   0x7   :  { %p73_p4 = pnand %p72_p3, %p66_p0 }
   0x9   :  { %76 = shalt.err (!%p73_p4)
}
   0xa   :  { %16 = dma.hbm_to_vmem [thread:$0]  %s96_s0, 128, %s14_s7, [#allocation3]  }
   0xb   :  { %77 = dma.done.wait [#allocation3], 128  }
   0xc   :  { %78 = vsyncadd [#allocation3], 4294967168  ;;  %vm21_vm0 = vcmask 130048   ;;  %v20_v0 = vld [vmem:[#allocation2] sm:$0xff]  ;;  %vm43_vm1 = vcmask 7168  }
   0xd   :  { %v22_v1 = vsel %vm21_vm0, %v20_v0, -inf }
   0xe   :  { %23 = vmax.xlane.f32.xlu0 %v22_v1 }
  0x97   :  { %v24_v2 = vpop.xlane.xlu0 %23 }
  0x98   :  { %v25_v3 = vsub.f32 %v20_v0, %v24_v2 }
  0x9a   :  { %v26_v4 = vmul.f32 1.442695, %v25_v3 }
  0x9c   :  { %51 = vpow2.f32 %v26_v4 }
  0xa9   :  { %v52_v5 = vpop.eup %51 }
  0xaa   :  { %v28_v6 = vsel %vm21_vm0, %v52_v5, 0.0  ;;  %v31_v7 = vmul.f32 %v52_v5, %v25_v3 }
  0xab   :  { %29 = vadd.xlane.f32.xlu0 %v28_v6 }
  0xac   :  { %v32_v8 = vsel %vm21_vm0, %v31_v7, 0.0 }
  0xad   :  { %33 = vadd.xlane.f32.xlu1 %v32_v8 }
 0x134   :  { %v30_v9 = vpop.xlane.xlu0 %29 }
 0x135   :  { %53 = vrcp.f32 %v30_v9 }
 0x136   :  { %55 = vlog2.f32 %v30_v9  ;;  %v34_v15 = vpop.xlane.xlu1 %33 }
 0x142   :  { %v54_v10 = vpop.eup %53 }
 0x143   :  { %v36_v11 = vmul.f32 %v54_v10, %v30_v9  ;;  %v56_v13 = vpop.eup %55 }
 0x144   :  { %v40_v16 = vmul.f32 0.6931472, %v56_v13 }
 0x145   :  { %v37_v12 = vsub.f32 2.0, %v36_v11 }
 0x147   :  { %v38_v14 = vmul.f32 %v54_v10, %v37_v12 }
 0x149   :  { %v41_v17 = vmul.f32 %v38_v14, %v34_v15 }
 0x14b   :  { %v42_v18 = vsub.f32 %v40_v16, %v41_v17 }
 0x14d   :  { %44 = vst.msk [vmem:[%s97_s1] sm:$0xff] %vm43_vm1, %v42_v18 }
 0x14e   :  { %49 = vsyncpa [#allocation3], 1 }

</bundles_post_ra>
